<compile_context>
chip_gen: v7x
topology: tpu7x:2x2x1
jax: 0.10.0
libtpu: 0.0.40
codegen_flags: <defaults>
</compile_context>

<pallas_src>
import jax
import jax.numpy as jnp
from jax.experimental import pallas as pl
from jax.experimental.pallas import tpu as pltpu


def _round_up(n, m):
    return ((n + m - 1) // m) * m


def dqn_kernel(x_ref, w1_ref, b1_ref, w2_ref, b2_ref, w3_ref, b3_ref, o_ref):
    # One batch tile, batch on lanes: 3 MXU matmuls (f32 accumulation) +
    # f32 bias adds / ReLUs on lane-dense [features, TILE_B] tiles.
    xT = x_ref[...]                                                   # (in_dim, TB)
    h1 = jnp.dot(w1_ref[...], xT,
                 preferred_element_type=jnp.float32) + b1_ref[...]    # (64, TB)
    h1 = jnp.maximum(h1, 0.0)
    h2 = jnp.dot(w2_ref[...], h1.astype(w2_ref.dtype),
                 preferred_element_type=jnp.float32) + b2_ref[...]    # (32, TB)
    h2 = jnp.maximum(h2, 0.0)
    out = jnp.dot(w3_ref[...], h2.astype(w3_ref.dtype),
                  preferred_element_type=jnp.float32) + b3_ref[...]   # (out_dim, TB)
    o_ref[...] = out.astype(o_ref.dtype)


def _pick_batch_tiling(B, tile_b):
    """Balanced, lane-aligned batch tiles; prefer an even tile count for v7x
    megacore when it adds no extra padding."""
    b128 = _round_up(B, 128)                      # lane alignment minimum
    n_tiles = max(1, pl.cdiv(b128, tile_b))
    if n_tiles == 1:
        if b128 >= 256 and b128 % 256 == 0:
            n_tiles = 2                           # give TC#1 work on v7x, padding-free
    elif n_tiles % 2 == 1:
        n_tiles += 1                              # even split; tb shrinks to balance
    tb = _round_up(pl.cdiv(b128, n_tiles), 128)
    n_tiles = pl.cdiv(b128, tb)
    return tb, tb * n_tiles, n_tiles


def dqn_forward(x, params, *, tile_b=2048, use_bf16=False):
    """Pallas forward. x: [B, input_dim] f32. params: w{i} [out,in], b{i} [out,1]."""
    B, in_dim = x.shape
    out_dim = params["w3"].shape[0]

    tb, b_padded, n_tiles = _pick_batch_tiling(B, tile_b)
    if b_padded != B:
        x = jnp.pad(x, ((0, b_padded - B), (0, 0)))

    mxu_dtype = jnp.bfloat16 if use_bf16 else jnp.float32
    xT = x.T.astype(mxu_dtype)                       # (in_dim, b_padded), batch on lanes
    w1 = params["w1"].astype(mxu_dtype)              # (64, in_dim)
    w2 = params["w2"].astype(mxu_dtype)              # (32, 64)
    w3 = params["w3"].astype(mxu_dtype)              # (out_dim, 32)
    b1, b2, b3 = params["b1"], params["b2"], params["b3"]   # (out,1) f32

    tiled = lambda i: (0, i)        # activations: one lane-block per grid step
    resident = lambda i: (0, 0)     # weights/biases: constant block -> VMEM-resident

    outT = pl.pallas_call(
        dqn_kernel,
        out_shape=jax.ShapeDtypeStruct((out_dim, b_padded), jnp.float32),
        grid=(n_tiles,),
        in_specs=[
            pl.BlockSpec((in_dim, tb), tiled),
            pl.BlockSpec(w1.shape, resident),
            pl.BlockSpec(b1.shape, resident),
            pl.BlockSpec(w2.shape, resident),
            pl.BlockSpec(b2.shape, resident),
            pl.BlockSpec(w3.shape, resident),
            pl.BlockSpec(b3.shape, resident),
        ],
        out_specs=pl.BlockSpec((out_dim, tb), tiled),
        compiler_params=pltpu.CompilerParams(
            dimension_semantics=("parallel",)),
    )(xT, w1, b1, w2, b2, w3, b3)

    return outT.T[:B]


def dqn_reference(x, params):
    """Pure f32 XLA reference (matches the PyTorch module exactly)."""
    h1 = jnp.maximum(x @ params["w1"].T + params["b1"].T, 0.0)
    h2 = jnp.maximum(h1 @ params["w2"].T + params["b2"].T, 0.0)
    return h2 @ params["w3"].T + params["b3"].T


def dqn_apply(x, params, *, small_batch_threshold=128, **kw):
    """Dispatch: tiny batches -> plain XLA (launch/DMA overhead dominates);
    large (replay-buffer) batches -> fused Pallas kernel."""
    if x.shape[0] <= small_batch_threshold:
        return dqn_reference(x, params)
    return dqn_forward(x, params, **kw)


def init_dqn_params(key, input_dim, output_dim):
    """Deterministic init matching PyTorch nn.Linear default:
    U(-1/sqrt(fan_in), 1/sqrt(fan_in)); weights kept in PyTorch [out,in] layout."""
    dims = [(input_dim, 64), (64, 32), (32, output_dim)]
    params = {}
    for i, (fan_in, fan_out) in enumerate(dims, start=1):
        key, kw, kb = jax.random.split(key, 3)
        bound = 1.0 / jnp.sqrt(jnp.float32(fan_in))
        params[f"w{i}"] = jax.random.uniform(
            kw, (fan_out, fan_in), jnp.float32, -bound, bound)
        params[f"b{i}"] = jax.random.uniform(
            kb, (fan_out, 1), jnp.float32, -bound, bound)
    return params


if __name__ == "__main__":
    key = jax.random.PRNGKey(0)
    INPUT_DIM = 4   # (player_x, player_y, collectible_x, collectible_y)
    OUTPUT_DIM = 4  # Q-values for 4 actions

    key, kx1, kx2, kp = jax.random.split(key, 4)
    params = init_dqn_params(kp, INPUT_DIM, OUTPUT_DIM)

    # Small batch: force the Pallas kernel (single tile path), exact-f32 check.
    x_small = jax.random.uniform(kx1, (8, INPUT_DIM), jnp.float32)
    out_small = jax.block_until_ready(dqn_forward(x_small, params))
    assert out_small.shape == (8, OUTPUT_DIM)
    ref_small = dqn_reference(x_small, params)
    assert jnp.allclose(out_small, ref_small, atol=1e-4, rtol=1e-4), \
        float(jnp.max(jnp.abs(out_small - ref_small)))

    # Larger batch: exercises the multi-tile ("parallel") path, exact-f32 check.
    x_big = jax.random.uniform(kx2, (512, INPUT_DIM), jnp.float32)
    out_big = jax.block_until_ready(dqn_forward(x_big, params, tile_b=256))
    assert out_big.shape == (512, OUTPUT_DIM)
    ref_big = dqn_reference(x_big, params)
    assert jnp.allclose(out_big, ref_big, atol=1e-4, rtol=1e-4), \
        float(jnp.max(jnp.abs(out_big - ref_big)))

    # Optional bf16-MXU path (looser tolerance vs. the f32 reference).
    out_bf16 = jax.block_until_ready(dqn_forward(x_big, params, use_bf16=True))
    assert jnp.allclose(out_bf16, ref_big, atol=5e-2, rtol=5e-2), \
        float(jnp.max(jnp.abs(out_bf16 - ref_big)))

    # Dispatch helper (small batch routes to XLA, large to Pallas).
    _ = jax.block_until_ready(dqn_apply(x_small, params))
    _ = jax.block_until_ready(dqn_apply(x_big, params))

    print("KERNEL_OK")
</pallas_src>

<mosaic_0001>
module attributes {stable_mosaic.version = 11 : i64} {
  func.func @dqn_kernel(%arg0: i32, %arg1: memref<4x128xf32, #tpu.memory_space<vmem>>, %arg2: memref<64x4xf32, #tpu.memory_space<vmem>>, %arg3: memref<64x1xf32, #tpu.memory_space<vmem>>, %arg4: memref<32x64xf32, #tpu.memory_space<vmem>>, %arg5: memref<32x1xf32, #tpu.memory_space<vmem>>, %arg6: memref<4x32xf32, #tpu.memory_space<vmem>>, %arg7: memref<4x1xf32, #tpu.memory_space<vmem>>, %arg8: memref<4x128xf32, #tpu.memory_space<vmem>>) attributes {dimension_semantics = [#tpu.dimension_semantics<parallel>], iteration_bounds = array<i64: 1>, scalar_prefetch = 0 : i64, scratch_operands = 0 : i64, tpu.core_type = #tpu.core_type<tc>, window_params = [{transform_indices = @transform_0, window_bounds = array<i64: 4, 128>}, {pipeline_mode = #tpu.pipeline_mode<synchronous>, transform_indices = @transform_1, window_bounds = array<i64: 64, 4>}, {pipeline_mode = #tpu.pipeline_mode<synchronous>, transform_indices = @transform_2, window_bounds = array<i64: 64, 1>}, {pipeline_mode = #tpu.pipeline_mode<synchronous>, transform_indices = @transform_3, window_bounds = array<i64: 32, 64>}, {pipeline_mode = #tpu.pipeline_mode<synchronous>, transform_indices = @transform_4, window_bounds = array<i64: 32, 1>}, {pipeline_mode = #tpu.pipeline_mode<synchronous>, transform_indices = @transform_5, window_bounds = array<i64: 4, 32>}, {pipeline_mode = #tpu.pipeline_mode<synchronous>, transform_indices = @transform_6, window_bounds = array<i64: 4, 1>}, {transform_indices = @transform_7, window_bounds = array<i64: 4, 128>}]} {
    %c0 = arith.constant 0 : index
    %c0_0 = arith.constant 0 : index
    %0 = vector.load %arg1[%c0, %c0_0] : memref<4x128xf32, #tpu.memory_space<vmem>>, vector<4x128xf32>
    %c0_1 = arith.constant 0 : index
    %c0_2 = arith.constant 0 : index
    %1 = vector.load %arg2[%c0_1, %c0_2] : memref<64x4xf32, #tpu.memory_space<vmem>>, vector<64x4xf32>
    %cst = arith.constant dense<0.000000e+00> : vector<64x128xf32>
    %2 = tpu.matmul %1, %0, %cst {dimension_numbers = #tpu.dot_dimension_numbers<[1], [0], [0], [1], [0, 0, 1, 1], [], []>} : vector<64x4xf32>, vector<4x128xf32>, vector<64x128xf32> -> vector<64x128xf32>
    %c0_3 = arith.constant 0 : index
    %c0_4 = arith.constant 0 : index
    %3 = vector.load %arg3[%c0_3, %c0_4] : memref<64x1xf32, #tpu.memory_space<vmem>>, vector<64x1xf32>
    %4 = vector.broadcast %3 : vector<64x1xf32> to vector<64x128xf32>
    %5 = arith.addf %2, %4 : vector<64x128xf32>
    %cst_5 = arith.constant 0.000000e+00 : f32
    %6 = vector.broadcast %cst_5 : f32 to vector<64x128xf32>
    %7 = arith.maximumf %5, %6 : vector<64x128xf32>
    %c0_6 = arith.constant 0 : index
    %c0_7 = arith.constant 0 : index
    %8 = vector.load %arg4[%c0_6, %c0_7] : memref<32x64xf32, #tpu.memory_space<vmem>>, vector<32x64xf32>
    %cst_8 = arith.constant dense<0.000000e+00> : vector<32x128xf32>
    %9 = tpu.matmul %8, %7, %cst_8 {dimension_numbers = #tpu.dot_dimension_numbers<[1], [0], [0], [1], [0, 0, 1, 1], [], []>} : vector<32x64xf32>, vector<64x128xf32>, vector<32x128xf32> -> vector<32x128xf32>
    %c0_9 = arith.constant 0 : index
    %c0_10 = arith.constant 0 : index
    %10 = vector.load %arg5[%c0_9, %c0_10] : memref<32x1xf32, #tpu.memory_space<vmem>>, vector<32x1xf32>
    %11 = vector.broadcast %10 : vector<32x1xf32> to vector<32x128xf32>
    %12 = arith.addf %9, %11 : vector<32x128xf32>
    %cst_11 = arith.constant 0.000000e+00 : f32
    %13 = vector.broadcast %cst_11 : f32 to vector<32x128xf32>
    %14 = arith.maximumf %12, %13 : vector<32x128xf32>
    %c0_12 = arith.constant 0 : index
    %c0_13 = arith.constant 0 : index
    %15 = vector.load %arg6[%c0_12, %c0_13] : memref<4x32xf32, #tpu.memory_space<vmem>>, vector<4x32xf32>
    %cst_14 = arith.constant dense<0.000000e+00> : vector<4x128xf32>
    %16 = tpu.matmul %15, %14, %cst_14 {dimension_numbers = #tpu.dot_dimension_numbers<[1], [0], [0], [1], [0, 0, 1, 1], [], []>} : vector<4x32xf32>, vector<32x128xf32>, vector<4x128xf32> -> vector<4x128xf32>
    %c0_15 = arith.constant 0 : index
    %c0_16 = arith.constant 0 : index
    %17 = vector.load %arg7[%c0_15, %c0_16] : memref<4x1xf32, #tpu.memory_space<vmem>>, vector<4x1xf32>
    %18 = vector.broadcast %17 : vector<4x1xf32> to vector<4x128xf32>
    %19 = arith.addf %16, %18 : vector<4x128xf32>
    %c0_17 = arith.constant 0 : index
    %c0_18 = arith.constant 0 : index
    %20 = vector.load %arg8[%c0_17, %c0_18] : memref<4x128xf32, #tpu.memory_space<vmem>>, vector<4x128xf32>
    tpu.vector_store %arg8[%c0_17, %c0_18], %19 {strides = array<i32>} : memref<4x128xf32, #tpu.memory_space<vmem>>, vector<4x128xf32>,
    return
  }
  func.func @transform_0(%arg0: i32) -> (i32, i32) {
    %c0_i32 = arith.constant 0 : i32
    %c0_i32_0 = arith.constant 0 : i32
    return %c0_i32, %arg0 : i32, i32
  }
  func.func @transform_1(%arg0: i32) -> (i32, i32) {
    %c0_i32 = arith.constant 0 : i32
    %c0_i32_0 = arith.constant 0 : i32
    %c0_i32_1 = arith.constant 0 : i32
    return %c0_i32, %c0_i32_0 : i32, i32
  }
  func.func @transform_2(%arg0: i32) -> (i32, i32) {
    %c0_i32 = arith.constant 0 : i32
    %c0_i32_0 = arith.constant 0 : i32
    %c0_i32_1 = arith.constant 0 : i32
    return %c0_i32, %c0_i32_0 : i32, i32
  }
  func.func @transform_3(%arg0: i32) -> (i32, i32) {
    %c0_i32 = arith.constant 0 : i32
    %c0_i32_0 = arith.constant 0 : i32
    %c0_i32_1 = arith.constant 0 : i32
    return %c0_i32, %c0_i32_0 : i32, i32
  }
  func.func @transform_4(%arg0: i32) -> (i32, i32) {
    %c0_i32 = arith.constant 0 : i32
    %c0_i32_0 = arith.constant 0 : i32
    %c0_i32_1 = arith.constant 0 : i32
    return %c0_i32, %c0_i32_0 : i32, i32
  }
  func.func @transform_5(%arg0: i32) -> (i32, i32) {
    %c0_i32 = arith.constant 0 : i32
    %c0_i32_0 = arith.constant 0 : i32
    %c0_i32_1 = arith.constant 0 : i32
    return %c0_i32, %c0_i32_0 : i32, i32
  }
  func.func @transform_6(%arg0: i32) -> (i32, i32) {
    %c0_i32 = arith.constant 0 : i32
    %c0_i32_0 = arith.constant 0 : i32
    %c0_i32_1 = arith.constant 0 : i32
    return %c0_i32, %c0_i32_0 : i32, i32
  }
  func.func @transform_7(%arg0: i32) -> (i32, i32) {
    %c0_i32 = arith.constant 0 : i32
    %c0_i32_0 = arith.constant 0 : i32
    return %c0_i32, %arg0 : i32, i32
  }
}

</mosaic_0001>

<bundles_post_ra>
// kernel: tpu_custom_call.1
= control target key start
LH: loop header
LB: loop body
LE: loop exit
PB: predicated region body
PF: predicated region fallthrough
CT: control target
= control target key end

     0   :  { %vm109_vm0 = vcmask 1043456   ;;  %vm84_vm1 = vcmask 31744   ;;  %v592_v4 = vmov 0   ;;  %s742_s0 = inlined_call_operand.vmem [shape: f32[4,128], index: 0, kind: input, shape index: {}]   ;;  %s743_s1 = inlined_call_operand.vmem [shape: f32[64,4], index: 1, kind: input, shape index: {}]   ;;  %s744_s2 = inlined_call_operand.vmem [shape: f32[64,1], index: 2, kind: input, shape index: {}]   ;;  %s745_s3 = inlined_call_operand.vmem [shape: f32[32,64], index: 3, kind: input, shape index: {}]   ;;  %s746_s4 = inlined_call_operand.vmem [shape: f32[32,1], index: 4, kind: input, shape index: {}]   ;;  %s747_s5 = inlined_call_operand.vmem [shape: f32[4,32], index: 5, kind: input, shape index: {}]   ;;  %s748_s6 = inlined_call_operand.vmem [shape: f32[4,1], index: 6, kind: input, shape index: {}]   ;;  %s749_s7 = inlined_call_operand.hbm [shape: f32[4,128], index: 7, kind: output, shape index: {}]  }
   0x1   :  { %v27_v0 = vld [vmem:[%s742_s0] sm:$0xf]  ;;  %v29_v2 = vld [vmem:[%s743_s1 + $0x8] sm:$0xff]  ;;  %v30_v3 = vld [vmem:[%s743_s1 + $0x10] sm:$0xff]  ;;  %566 = vset.pattern.permute.xlu0 %v592_v4  ;;  %567 = vset.pattern.permute.xlu1 %v592_v4 }
   0x2   :  { %v28_v1 = vld [vmem:[%s743_s1] sm:$0xff]  ;;  %492 = vmatprep.subr.msk.mxu0 %vm109_vm0, %v27_v0  ;;  %v38_v6 = vld [vmem:[%s744_s2 + $0x10] sm:$0xff]  ;;  %v31_v7 = vld [vmem:[%s743_s1 + $0x18] sm:$0xff] }
   0x3   :  { %494 = vmatprep.mubr.msk.f32.mxu0 %vm84_vm1, %v28_v1  ;;  %493 = vmatpush3.msk.msra.mxu0 %vm109_vm0, %v27_v0  ;;  %v36_v5 = vld [vmem:[%s744_s2] sm:$0xff]  ;;  %v37_v9 = vld [vmem:[%s744_s2 + $0x8] sm:$0xff]  ;;  %v39_v10 = vld [vmem:[%s744_s2 + $0x18] sm:$0xff] }
   0x4   :  { %495 = vmatmul.mubr.msk.f32.vlgmr.msra.gmra.mrb[0].mxu0 %vm84_vm1, %v29_v2  ;;  %46 = vperm.xlu0 %566, %v36_v5   ;;  %v32_v8 = vld [vmem:[%s743_s1 + $0x20] sm:$0xff] }
   0x5   :  { %497 = vmatprep.mubr.msk.f32.mxu0 %vm84_vm1, %v30_v3  ;;  %56 = vperm.xlu1 %567, %v38_v6  }
   0x8   :  { %498 = vmatmul.mubr.msk.f32.gmra.mrb[2].mxu0 %vm84_vm1, %v31_v7 }
   0x9   :  { %12 = vsyncpa [#allocation3], 0  ;;  %500 = vmatprep.mubr.msk.f32.mxu0 %vm84_vm1, %v32_v8  ;;  %v33_v11 = vld [vmem:[%s743_s1 + $0x28] sm:$0xff]  ;;  %51 = vperm.xlu0 %566, %v37_v9   ;;  %v34_v12 = vld [vmem:[%s743_s1 + $0x30] sm:$0xff]  ;;  %vm254_vm2 = vcmask 523264   ;;  %v593_v63 = vmov 0.0|0.0  }
   0xa   :  { %v40_v13 = vld [vmem:[%s744_s2 + $0x20] sm:$0xff]  ;;  %61 = vperm.xlu1 %567, %v39_v10   ;;  %v41_v14 = vld [vmem:[%s744_s2 + $0x28] sm:$0xff]  ;;  %v35_v15 = vld [vmem:[%s743_s1 + $0x38] sm:$0xff]  ;;  %555 = vmatprep.subr.bf16.mxu0 %v593_v63  ;;  %vm594_vm3 = vmmov 0   ;;  %v595_v0 = vmov 0.0   ;;  %vm363_vm4 = vcmask 261120  }
   0xb   :  { %v42_v16 = vld [vmem:[%s744_s2 + $0x30] sm:$0xff]  ;;  %v43_v17 = vld [vmem:[%s744_s2 + $0x38] sm:$0xff]  ;;  %v230_v18 = vld [vmem:[%s746_s4] sm:$0xff]  ;;  %s596_s25 = smov [#allocation2]  }
   0xc   :  { %501 = vmatmul.mubr.msk.f32.gmra.mrb[4].mxu0 %vm84_vm1, %v33_v11  ;;  %v231_v19 = vld [vmem:[%s746_s4 + $0x8] sm:$0xff]  ;;  %v232_v20 = vld [vmem:[%s746_s4 + $0x10] sm:$0xff]  ;;  %v233_v21 = vld [vmem:[%s746_s4 + $0x18] sm:$0xff]  ;;  %s444_s26 = sshll.u32 %s596_s25, 4  ;;  %s445_s26 = int_to_ptr.vmem [resolvable:$true] %s444_s26 }
   0xd   :  { %503 = vmatprep.mubr.msk.f32.mxu0 %vm84_vm1, %v34_v12  ;;  %66 = vperm.xlu0 %566, %v40_v13   ;;  %v357_v22 = vld [vmem:[%s748_s6] sm:$0xf]  ;;  %v227_v60 = vld [vmem:[%s745_s3 + $0x8] sm:$0xff]  ;;  %v228_v61 = vld [vmem:[%s745_s3 + $0x10] sm:$0xff]  ;;  %s568_s27 = scalar_lea.vmem %s445_s26, 64  ;;  %p573_p1 = scmp.lt.s32.totalorder %s445_s26, %s445_s26 }
   0xe   :  { %71 = vperm.xlu1 %567, %v41_v14   ;;  %v226_v23 = vld [vmem:[%s745_s3] sm:$0xff]  ;;  %v229_v62 = vld [vmem:[%s745_s3 + $0x18] sm:$0xff]  ;;  %p569_p0 = scmp.ne.s32.totalorder %s445_s26, %s568_s27  ;;  %p574_p2 = scmp.lt.s32.totalorder %s568_s27, %s568_s27 }
   0xf   :  { %522 = vmatprep.mubr.msk.f32.mxu1 %vm254_vm2, %v226_v23 }
  0x10   :  { %504 = vmatmul.mubr.msk.f32.gmra.mrb[6].mxu0 %vm84_vm1, %v35_v15  ;;  %p575_p3 = por %p574_p2, %p573_p1 }
  0x11   :  { %76 = vperm.xlu0 %566, %v42_v16   ;;  %536 = vmatprep.mubr.msk.f32.mxu0 %vm594_vm3, %v595_v0 }
  0x12   :  { %81 = vperm.xlu1 %567, %v43_v17   ;;  %p576_p4 = pnand %p575_p3, %p569_p0 }
  0x15   :  { %236 = vperm.xlu0 %566, %v230_v18  }
  0x16   :  { %241 = vperm.xlu1 %567, %v231_v19   ;;  %v356_v19 = vld [vmem:[%s747_s5] sm:$0xf] }
  0x19   :  { %246 = vperm.xlu0 %566, %v232_v20  }
  0x1a   :  { %251 = vperm.xlu1 %567, %v233_v21  }
  0x1d   :  { %360 = vperm.xlu0 %566, %v357_v22  }
  0x83   :  { %v47_v24 = vpop.permute.xlu0 %46 }
  0x84   :  { %v57_v25 = vpop.permute.xlu1 %56 }
  0x88   :  { %v52_v26 = vpop.permute.xlu0 %51 }
  0x89   :  { %v62_v27 = vpop.permute.xlu1 %61 }
  0x8c   :  { %v67_v40 = vpop.permute.xlu0 %66 }
  0x8d   :  { %v72_v37 = vpop.permute.xlu1 %71 }
  0x90   :  { %v77_v52 = vpop.permute.xlu0 %76 }
  0x91   :  { %v82_v49 = vpop.permute.xlu1 %81 }
  0x94   :  { %v237_v2 = vpop.permute.xlu0 %236 }
  0x95   :  { %v242_v1 = vpop.permute.xlu1 %241 }
  0x98   :  { %v247_v11 = vpop.permute.xlu0 %246 }
  0x99   :  { %v252_v8 = vpop.permute.xlu1 %251 }
  0x9c   :  { %v361_v20 = vpop.permute.xlu0 %360 }
  0xd7   :  { %v496_v28 = vpop.f32.mrb[0].mxu0 }
  0xd8   :  { %v185_v29 = vadd.f32 %v496_v28, %v52_v26  ;;  %v179_v30 = vpop.f32.mrb[1].mxu0 }
  0xd9   :  { %v180_v31 = vadd.f32 %v179_v30, %v47_v24 }
  0xda   :  { %v219_v32 = vmax.f32 %v185_v29, 0.0 }
  0xdb   :  { %v218_v33 = vmax.f32 %v180_v31, 0.0  ;;  %v499_v34 = vpop.f32.mrb[2].mxu0 }
  0xdc   :  { %v195_v35 = vadd.f32 %v499_v34, %v62_v27  ;;  %v189_v36 = vpop.f32.mrb[3].mxu0 }
  0xdd   :  { %v190_v38 = vadd.f32 %v189_v36, %v57_v25  ;;  %v539_v39 = vpack.c.bf16 %v219_v32, %v218_v33 }
  0xde   :  { %v221_v41 = vmax.f32 %v195_v35, 0.0 }
  0xdf   :  { %v220_v42 = vmax.f32 %v190_v38, 0.0  ;;  %v502_v43 = vpop.f32.mrb[4].mxu0  ;;  %540 = vmatprep.subr.bf16.mxu1 %v539_v39 }
  0xe0   :  { %v205_v44 = vadd.f32 %v502_v43, %v72_v37  ;;  %v199_v45 = vpop.f32.mrb[5].mxu0  ;;  %542 = vmatpush3.bf16.msra.mxu1 %v539_v39 }
  0xe1   :  { %v543_v46 = vpack.c.bf16 %v221_v41, %v220_v42  ;;  %v200_v47 = vadd.f32 %v199_v45, %v67_v40 }
  0xe2   :  { %v223_v48 = vmax.f32 %v205_v44, 0.0 }
  0xe3   :  { %v222_v50 = vmax.f32 %v200_v47, 0.0  ;;  %v505_v51 = vpop.f32.mrb[6].mxu0  ;;  %544 = vmatprep.subr.bf16.mxu1 %v543_v46 }
  0xe4   :  { %v215_v53 = vadd.f32 %v505_v51, %v82_v49  ;;  %v209_v54 = vpop.f32.mrb[7].mxu0  ;;  %546 = vmatpush3.bf16.msra.mxu1 %v543_v46 }
  0xe5   :  { %v547_v55 = vpack.c.bf16 %v223_v48, %v222_v50  ;;  %v210_v56 = vadd.f32 %v209_v54, %v77_v52 }
  0xe6   :  { %v225_v57 = vmax.f32 %v215_v53, 0.0 }
  0xe7   :  { %v224_v58 = vmax.f32 %v210_v56, 0.0  ;;  %548 = vmatprep.subr.bf16.mxu1 %v547_v55 }
  0xe8   :  { %550 = vmatpush3.bf16.msra.mxu1 %v547_v55 }
  0xe9   :  { %v551_v59 = vpack.c.bf16 %v225_v57, %v224_v58 }
  0xeb   :  { %552 = vmatprep.subr.bf16.mxu1 %v551_v59 }
  0xec   :  { %554 = vmatpush3.bf16.msra.mxu1 %v551_v59 }
  0xef   :  { %523 = vmatmul.mubr.msk.f32.vlgmr.msra.gmra.mrb[0].mxu1 %vm254_vm2, %v227_v60 }
  0xf0   :  { %525 = vmatprep.mubr.msk.f32.mxu1 %vm254_vm2, %v228_v61 }
  0xf3   :  { %526 = vmatmul.mubr.msk.f32.gmra.mrb[2].mxu1 %vm254_vm2, %v229_v62 }
 0x1c2   :  { %v524_v3 = vpop.f32.mrb[0].mxu1 }
 0x1c3   :  { %v339_v4 = vadd.f32 %v524_v3, %v242_v1  ;;  %v333_v5 = vpop.f32.mrb[1].mxu1 }
 0x1c4   :  { %v334_v6 = vadd.f32 %v333_v5, %v237_v2 }
 0x1c5   :  { %v353_v7 = vmax.f32 %v339_v4, 0.0 }
 0x1c6   :  { %v352_v9 = vmax.f32 %v334_v6, 0.0  ;;  %v527_v10 = vpop.f32.mrb[2].mxu1 }
 0x1c7   :  { %v349_v12 = vadd.f32 %v527_v10, %v252_v8  ;;  %v343_v13 = vpop.f32.mrb[3].mxu1 }
 0x1c8   :  { %v556_v14 = vpack.c.bf16 %v353_v7, %v352_v9  ;;  %v344_v15 = vadd.f32 %v343_v13, %v247_v11 }
 0x1c9   :  { %v355_v16 = vmax.f32 %v349_v12, 0.0 }
 0x1ca   :  { %v354_v17 = vmax.f32 %v344_v15, 0.0  ;;  %557 = vmatpush3.bf16.msra.mxu0 %v556_v14 }
 0x1cb   :  { %558 = vmatprep.subr.bf16.mxu0 %v593_v63 }
 0x1cc   :  { %v559_v18 = vpack.c.bf16 %v355_v16, %v354_v17 }
 0x1ce   :  { %560 = vmatpush3.bf16.msra.mxu0 %v559_v18 }
 0x1d1   :  { %537 = vmatmul.mubr.msk.f32.vlgmr.msra.gmra.mrb[8].mxu0 %vm363_vm4, %v356_v19 }
 0x2a4   :  { %v433_v21 = vpop.f32.mrb[8].mxu0 }
 0x2a5   :  { %v434_v22 = vadd.f32 %v433_v21, %v361_v20  ;;  %v538_v23 = vpop.f32.mrb[9].mxu0 }
 0x2a7   :  { %437 = vst [vmem:[#allocation2] sm:$0xf] %v434_v22 }
 0x2a8   :  { %579 = shalt.err (!%p576_p4)
}
 0x2a9   :  { %s580_s5 = scalar_lea.hbm %s749_s7, 64 }
 0x2aa   :  { %p581_p5 = scmp.ne.s32.totalorder %s749_s7, %s580_s5  ;;  %p584_p6 = scmp.lt.u32.totalorder %s580_s5, %s749_s7 }
 0x2ac   :  { %p586_p7 = pnand %p584_p6, %p581_p5 }
 0x2ae   :  { %589 = shalt.err (!%p586_p7)
}
 0x2af   :  { %447 = dma.vmem_to_hbm [thread:$0]  %s445_s26, 64, %s749_s7, [#allocation3]  }
 0x2b0   :  { %590 = dma.done.wait [#allocation3], 64  }
 0x2b1   :  { %591 = vsyncadd [#allocation3], 4294967232 }
 0x2b2   :  { %451 = vsyncpa [#allocation3], 1 }

</bundles_post_ra>
